<compile_context>
chip_gen: v5e
topology: v5e:2x2
jax: 0.10.0
libtpu: 0.0.40
codegen_flags: <defaults>
</compile_context>

<pallas_src>
import math

import jax
import jax.numpy as jnp
from jax.experimental import pallas as pl
from jax.experimental.pallas import tpu as pltpu

ALPHA = 0.25
GAMMA = 1.5
LOG_PT_FLOOR = math.log(1e-7)        # pt.clamp(1e-7, 1.0) -> floor in log-space
W_POS = -ALPHA / GAMMA               # folded  -w/gamma  for target class
W_NEG = -(1.0 - ALPHA) / GAMMA       # folded  -w/gamma  for non-target class


def _round_up(x, m):
    return ((x + m - 1) // m) * m


def _focal_loss1_kernel(y_ref, loc8_ref, cls_ref, out_ref):
    """Grid = (parallel_slice, anchor_tile).

    Each step processes one lane-dense tile of anchors and accumulates four
    lane-wise partial-sum rows into the slice-resident (1, 4, tile_n) output:
        row 0: smooth-L1 loc loss (positives only)
        row 1: focal cls loss     (non-ignored only)
        row 2: num_pos            row 3: num_pos_neg
    """
    i = pl.program_id(1)

    @pl.when(i == 0)
    def _init():
        out_ref[...] = jnp.zeros_like(out_ref)

    y = y_ref[...]                                   # (1, TN) int32 labels
    pos = y > 0                                      # bool: positives
    pos_neg = y > -1                                 # bool: non-ignored
    pos_f = pos.astype(jnp.float32)
    pneg_f = pos_neg.astype(jnp.float32)

    # ---- SmoothL1 (beta=1, sum) over positive anchors ----
    # loc8 rows 0..3 = loc_preds coords, rows 4..7 = loc_targets coords.
    l8 = loc8_ref[...].astype(jnp.float32)           # (8, TN)
    d = jnp.abs(l8[0:4] - l8[4:8])                   # (4, TN)
    sl1 = jnp.where(d < 1.0, (0.5 * d) * d, d - 0.5)
    loc_row = jnp.where(pos, jnp.sum(sl1, axis=0, keepdims=True), 0.0)  # (1, TN)

    # ---- focal_loss_alt over non-ignored anchors ----
    x = cls_ref[...].astype(jnp.float32)             # (C, TN) logits
    cls_idx = jax.lax.broadcasted_iota(jnp.int32, x.shape, 0) + 1
    t = y == cls_idx                                 # bool one_hot(y, C+1)[1:] on sublanes
    u = x + x                                        # 2*x
    z = jnp.where(t, u, -u) + 1.0                    # 2*x*(2t-1) + 1
    # exact: log(clip(sigmoid(z), 1e-7, 1)) == max(log_sigmoid(z), log(1e-7))
    log_pt = jnp.minimum(z, 0.0) - jnp.log(1.0 + jnp.exp(-jnp.abs(z)))
    log_pt = jnp.maximum(log_pt, LOG_PT_FLOOR)
    w = jnp.where(t, W_POS, W_NEG)                   # -(alpha*t+(1-alpha)*(1-t))/gamma
    cls_row = jnp.where(pos_neg,
                        jnp.sum(w * log_pt, axis=0, keepdims=True), 0.0)  # (1, TN)

    # Four direct row accumulations (no concat temp).
    out_ref[0, 0:1, :] += loc_row
    out_ref[0, 1:2, :] += cls_row
    out_ref[0, 2:3, :] += pos_f
    out_ref[0, 3:4, :] += pneg_f


def focal_loss1_lanes(cls_targets_row, loc8, cls_logits, num_classes, *,
                      tile_n=None, max_tile_n=8192, num_parallel=1):
    """Lane-dense core API (anchors on the last axis).

    cls_targets_row: [1, N] int labels (-1 ignore, 0 background, 1..C class)
    loc8:            [8, N] rows 0..3 = loc_preds, rows 4..7 = loc_targets
    cls_logits:      [C, N] class logits (f32 or bf16)
    Returns scalar f32 loss = loc_loss/num_pos + cls_loss/num_pos_neg.
    """
    C, N = cls_logits.shape
    assert C == num_classes
    assert loc8.shape == (8, N)
    assert cls_targets_row.shape == (1, N)

    if tile_n is None:
        # Adaptive tile: big enough to amortize per-step overhead, no giant
        # padding for small inputs.  VMEM footprint stays tiny on all gens.
        tile_n = min(max_tile_n, _round_up(pl.cdiv(N, num_parallel), 128))
    tile_n = _round_up(tile_n, 128)

    chunk = num_parallel * tile_n
    n_pad_total = _round_up(N, chunk)
    pad = n_pad_total - N

    y = cls_targets_row.astype(jnp.int32)
    if pad:
        # Padded anchors carry label -1 (ignored) -> contribute exactly 0 to
        # all four accumulator rows (pos/pos_neg gate everything).
        loc8 = jnp.pad(loc8, ((0, 0), (0, pad)))
        cls_logits = jnp.pad(cls_logits, ((0, 0), (0, pad)))
        y = jnp.pad(y, ((0, 0), (0, pad)), constant_values=-1)
    tiles_per_slice = n_pad_total // chunk

    partials = pl.pallas_call(
        _focal_loss1_kernel,
        out_shape=jax.ShapeDtypeStruct((num_parallel, 4, tile_n), jnp.float32),
        grid_spec=pltpu.PrefetchScalarGridSpec(
            num_scalar_prefetch=0,
            grid=(num_parallel, tiles_per_slice),
            in_specs=[
                pl.BlockSpec((1, tile_n),
                             lambda c, i: (0, c * tiles_per_slice + i)),
                pl.BlockSpec((8, tile_n),
                             lambda c, i: (0, c * tiles_per_slice + i)),
                pl.BlockSpec((C, tile_n),
                             lambda c, i: (0, c * tiles_per_slice + i)),
            ],
            out_specs=pl.BlockSpec((1, 4, tile_n), lambda c, i: (c, 0, 0)),
        ),
        compiler_params=pltpu.CompilerParams(
            dimension_semantics=("parallel", "arbitrary")),
    )(y, loc8, cls_logits)

    sums = jnp.sum(partials, axis=(0, 2))             # (4,)
    # NOTE: matches the PyTorch module (no guard against num_pos == 0).
    return sums[0] / sums[2] + sums[1] / sums[3]


def focal_loss1(loc_preds, loc_targets, cls_preds, cls_targets, num_classes, *,
                stream_dtype=jnp.bfloat16, **kwargs):
    """Natural-layout wrapper matching FocalLoss1.forward.

    loc_preds:   [B, A, 4] float        loc_targets: [B, A, 4] float
    cls_preds:   [B, A, C] float logits cls_targets: [B, A] int
    """
    B, A, _ = loc_preds.shape
    C = cls_preds.shape[-1]
    assert C == num_classes
    N = B * A

    # One fused transpose(+bf16 cast) pass per tensor to reach the lane-dense
    # layout.  TODO(synk): in production, emit loc/cls predictions directly in
    # anchors-on-lanes [C, N] / [8, N] layout from the head and call
    # focal_loss1_lanes() to skip this extra HBM pass entirely.
    loc8 = jnp.concatenate(
        [loc_preds.reshape(N, 4).T, loc_targets.reshape(N, 4).T], axis=0
    ).astype(stream_dtype)                            # (8, N)
    cls_t = cls_preds.reshape(N, C).T.astype(stream_dtype)   # (C, N)
    y = cls_targets.reshape(1, N).astype(jnp.int32)           # (1, N)

    return focal_loss1_lanes(y, loc8, cls_t, num_classes, **kwargs)


def _reference_loss(loc_preds, loc_targets, cls_preds, cls_targets, num_classes):
    """Pure-JAX reference mirroring the PyTorch module semantics (f32 math)."""
    pos = cls_targets > 0
    num_pos = jnp.sum(pos).astype(jnp.float32)
    d = jnp.abs(loc_preds - loc_targets)
    sl1 = jnp.where(d < 1.0, 0.5 * d * d, d - 0.5)
    loc_loss = jnp.sum(sl1 * pos[..., None].astype(jnp.float32))

    pos_neg = cls_targets > -1
    num_peg = jnp.sum(pos_neg).astype(jnp.float32)
    y = jnp.where(pos_neg, cls_targets, 0)
    t = jax.nn.one_hot(y, num_classes + 1, dtype=jnp.float32)[..., 1:]
    x = cls_preds
    xt = x * (2.0 * t - 1.0)
    pt = jnp.clip(jax.nn.sigmoid(2.0 * xt + 1.0), 1e-7, 1.0)
    w = ALPHA * t + (1.0 - ALPHA) * (1.0 - t)
    fl = -w * jnp.log(pt) / GAMMA
    cls_loss = jnp.sum(fl * pos_neg[..., None].astype(jnp.float32))
    return loc_loss / num_pos + cls_loss / num_peg


if __name__ == "__main__":
    key = jax.random.PRNGKey(0)
    k1, k2, k3, k4 = jax.random.split(key, 4)

    batch = 2
    anchors = 256
    num_classes = 20

    loc_preds = jax.random.normal(k1, (batch, anchors, 4), dtype=jnp.float32)
    loc_targets = jax.random.normal(k2, (batch, anchors, 4), dtype=jnp.float32)
    cls_preds = jax.random.normal(k3, (batch, anchors, num_classes),
                                  dtype=jnp.float32)
    # labels in {-1 (ignore), 0 (background), 1..num_classes (positive)}
    cls_targets = jax.random.randint(k4, (batch, anchors), -1, num_classes + 1,
                                     dtype=jnp.int32)

    loss = focal_loss1(loc_preds, loc_targets, cls_preds, cls_targets,
                       num_classes)
    loss = jax.block_until_ready(loss)

    # Kernel streams bf16 inputs; validate against a reference computed on the
    # identically-quantized inputs (f32 math), so only reduction order and the
    # exact log-sigmoid identity differ.
    def q(a):
        return a.astype(jnp.bfloat16).astype(jnp.float32)

    ref = _reference_loss(q(loc_preds), q(loc_targets), q(cls_preds),
                          cls_targets, num_classes)
    ref = jax.block_until_ready(ref)

    assert jnp.allclose(loss, ref, rtol=5e-4, atol=1e-3), (loss, ref)
    print("KERNEL_OK")
</pallas_src>

<mosaic_0001>
module attributes {stable_mosaic.version = 11 : i64} {
  func.func @_focal_loss1_kernel(%arg0: i32, %arg1: i32, %arg2: memref<1x512xi32, #tpu.memory_space<vmem>>, %arg3: memref<8x512xbf16, #tpu.memory_space<vmem>>, %arg4: memref<20x512xbf16, #tpu.memory_space<vmem>>, %arg5: memref<1x4x512xf32, #tpu.memory_space<vmem>>) attributes {dimension_semantics = [#tpu.dimension_semantics<parallel>, #tpu.dimension_semantics<arbitrary>], iteration_bounds = array<i64: 1, 1>, scalar_prefetch = 0 : i64, scratch_operands = 0 : i64, tpu.core_type = #tpu.core_type<tc>, window_params = [{transform_indices = @transform_0, window_bounds = array<i64: 1, 512>}, {transform_indices = @transform_1, window_bounds = array<i64: 8, 512>}, {transform_indices = @transform_2, window_bounds = array<i64: 20, 512>}, {transform_indices = @transform_3, window_bounds = array<i64: 1, 4, 512>}]} {
    %c0_i32 = arith.constant 0 : i32
    %0 = arith.cmpi eq, %arg1, %c0_i32 : i32
    %1 = arith.extui %0 : i1 to i32
    %c0_i32_0 = arith.constant 0 : i32
    %2 = arith.cmpi ne, %1, %c0_i32_0 : i32
    scf.if %2 {
      %cst_42 = arith.constant 0.000000e+00 : f32
      %87 = vector.broadcast %cst_42 : f32 to vector<1x4x512xf32>
      %c0_43 = arith.constant 0 : index
      %c0_44 = arith.constant 0 : index
      %c0_45 = arith.constant 0 : index
      %88 = vector.load %arg5[%c0_43, %c0_44, %c0_45] : memref<1x4x512xf32, #tpu.memory_space<vmem>>, vector<1x4x512xf32>
      tpu.vector_store %arg5[%c0_43, %c0_44, %c0_45], %87 {strides = array<i32>} : memref<1x4x512xf32, #tpu.memory_space<vmem>>, vector<1x4x512xf32>,
    } else {
    }
    %c0 = arith.constant 0 : index
    %c0_1 = arith.constant 0 : index
    %3 = vector.load %arg2[%c0, %c0_1] : memref<1x512xi32, #tpu.memory_space<vmem>>, vector<1x512xi32>
    %c0_i32_2 = arith.constant 0 : i32
    %4 = vector.broadcast %c0_i32_2 : i32 to vector<1x512xi32>
    %5 = arith.cmpi sgt, %3, %4 : vector<1x512xi32>
    %c-1_i32 = arith.constant -1 : i32
    %6 = vector.broadcast %c-1_i32 : i32 to vector<1x512xi32>
    %7 = arith.cmpi sgt, %3, %6 : vector<1x512xi32>
    %8 = arith.extui %5 : vector<1x512xi1> to vector<1x512xi32>
    %9 = arith.sitofp %8 : vector<1x512xi32> to vector<1x512xf32>
    %10 = arith.extui %7 : vector<1x512xi1> to vector<1x512xi32>
    %11 = arith.sitofp %10 : vector<1x512xi32> to vector<1x512xf32>
    %c0_3 = arith.constant 0 : index
    %c0_4 = arith.constant 0 : index
    %12 = vector.load %arg3[%c0_3, %c0_4] : memref<8x512xbf16, #tpu.memory_space<vmem>>, vector<8x512xbf16>
    %13 = arith.extf %12 : vector<8x512xbf16> to vector<8x512xf32>
    %14 = vector.extract_strided_slice %13 {offsets = [0, 0], sizes = [4, 512], strides = [1, 1]} : vector<8x512xf32> to vector<4x512xf32>
    %15 = vector.extract_strided_slice %13 {offsets = [4, 0], sizes = [4, 512], strides = [1, 1]} : vector<8x512xf32> to vector<4x512xf32>
    %16 = arith.subf %14, %15 : vector<4x512xf32>
    %17 = math.absf %16 : vector<4x512xf32>
    %cst = arith.constant 1.000000e+00 : f32
    %18 = vector.broadcast %cst : f32 to vector<4x512xf32>
    %19 = arith.cmpf olt, %17, %18 : vector<4x512xf32>
    %cst_5 = arith.constant 5.000000e-01 : f32
    %20 = vector.broadcast %cst_5 : f32 to vector<4x512xf32>
    %21 = arith.mulf %20, %17 : vector<4x512xf32>
    %22 = arith.mulf %21, %17 : vector<4x512xf32>
    %cst_6 = arith.constant 5.000000e-01 : f32
    %23 = vector.broadcast %cst_6 : f32 to vector<4x512xf32>
    %24 = arith.subf %17, %23 : vector<4x512xf32>
    %25 = arith.select %19, %22, %24 : vector<4x512xi1>, vector<4x512xf32>
    %cst_7 = arith.constant dense<0.000000e+00> : vector<512xf32>
    %26 = vector.multi_reduction <add>, %25, %cst_7 [0] : vector<4x512xf32> to vector<512xf32>
    %27 = vector.shape_cast %26 : vector<512xf32> to vector<1x512xf32>
    %cst_8 = arith.constant 0.000000e+00 : f32
    %28 = vector.broadcast %cst_8 : f32 to vector<1x512xf32>
    %29 = arith.select %5, %27, %28 : vector<1x512xi1>, vector<1x512xf32>
    %c0_9 = arith.constant 0 : index
    %c0_10 = arith.constant 0 : index
    %30 = vector.load %arg4[%c0_9, %c0_10] : memref<20x512xbf16, #tpu.memory_space<vmem>>, vector<20x512xbf16>
    %31 = arith.extf %30 : vector<20x512xbf16> to vector<20x512xf32>
    %32 = tpu.iota {dimensions = array<i32: 0>} : vector<20x512xi32>
    %c1_i32 = arith.constant 1 : i32
    %33 = vector.broadcast %c1_i32 : i32 to vector<20x512xi32>
    %34 = arith.addi %32, %33 : vector<20x512xi32>
    %35 = vector.broadcast %3 : vector<1x512xi32> to vector<20x512xi32>
    %36 = arith.cmpi eq, %35, %34 : vector<20x512xi32>
    %37 = arith.addf %31, %31 : vector<20x512xf32>
    %cst_11 = arith.constant 0.000000e+00 : f32
    %38 = vector.broadcast %cst_11 : f32 to vector<20x512xf32>
    %39 = arith.subf %38, %37 : vector<20x512xf32>
    %40 = arith.select %36, %37, %39 : vector<20x512xi1>, vector<20x512xf32>
    %cst_12 = arith.constant 1.000000e+00 : f32
    %41 = vector.broadcast %cst_12 : f32 to vector<20x512xf32>
    %42 = arith.addf %40, %41 : vector<20x512xf32>
    %cst_13 = arith.constant 0.000000e+00 : f32
    %43 = vector.broadcast %cst_13 : f32 to vector<20x512xf32>
    %44 = arith.minimumf %42, %43 : vector<20x512xf32>
    %45 = math.absf %42 : vector<20x512xf32>
    %cst_14 = arith.constant 0.000000e+00 : f32
    %46 = vector.broadcast %cst_14 : f32 to vector<20x512xf32>
    %47 = arith.subf %46, %45 : vector<20x512xf32>
    %48 = math.exp %47 : vector<20x512xf32>
    %cst_15 = arith.constant 1.000000e+00 : f32
    %49 = vector.broadcast %cst_15 : f32 to vector<20x512xf32>
    %50 = arith.addf %49, %48 : vector<20x512xf32>
    %51 = math.log %50 : vector<20x512xf32>
    %52 = arith.subf %44, %51 : vector<20x512xf32>
    %cst_16 = arith.constant -16.1180954 : f32
    %53 = vector.broadcast %cst_16 : f32 to vector<20x512xf32>
    %54 = arith.maximumf %52, %53 : vector<20x512xf32>
    %cst_17 = arith.constant -0.166666672 : f32
    %cst_18 = arith.constant -5.000000e-01 : f32
    %55 = vector.broadcast %cst_17 : f32 to vector<20x512xf32>
    %56 = vector.broadcast %cst_18 : f32 to vector<20x512xf32>
    %57 = arith.select %36, %55, %56 : vector<20x512xi1>, vector<20x512xf32>
    %58 = arith.mulf %57, %54 : vector<20x512xf32>
    %cst_19 = arith.constant dense<0.000000e+00> : vector<512xf32>
    %59 = vector.multi_reduction <add>, %58, %cst_19 [0] : vector<20x512xf32> to vector<512xf32>
    %60 = vector.shape_cast %59 : vector<512xf32> to vector<1x512xf32>
    %cst_20 = arith.constant 0.000000e+00 : f32
    %61 = vector.broadcast %cst_20 : f32 to vector<1x512xf32>
    %62 = arith.select %7, %60, %61 : vector<1x512xi1>, vector<1x512xf32>
    %c0_21 = arith.constant 0 : index
    %c0_22 = arith.constant 0 : index
    %c0_23 = arith.constant 0 : index
    %63 = vector.load %arg5[%c0_21, %c0_22, %c0_23] : memref<1x4x512xf32, #tpu.memory_space<vmem>>, vector<1x1x512xf32>
    %64 = vector.shape_cast %63 : vector<1x1x512xf32> to vector<1x512xf32>
    %65 = arith.addf %64, %29 : vector<1x512xf32>
    %c0_24 = arith.constant 0 : index
    %c0_25 = arith.constant 0 : index
    %c0_26 = arith.constant 0 : index
    %66 = vector.load %arg5[%c0_24, %c0_25, %c0_26] : memref<1x4x512xf32, #tpu.memory_space<vmem>>, vector<1x1x512xf32>
    %67 = vector.shape_cast %66 : vector<1x1x512xf32> to vector<1x512xf32>
    %68 = vector.shape_cast %65 : vector<1x512xf32> to vector<1x1x512xf32>
    tpu.vector_store %arg5[%c0_24, %c0_25, %c0_26], %68 {strides = array<i32>} : memref<1x4x512xf32, #tpu.memory_space<vmem>>, vector<1x1x512xf32>,
    %c0_27 = arith.constant 0 : index
    %c1 = arith.constant 1 : index
    %c0_28 = arith.constant 0 : index
    %69 = vector.load %arg5[%c0_27, %c1, %c0_28] : memref<1x4x512xf32, #tpu.memory_space<vmem>>, vector<1x1x512xf32>
    %70 = vector.shape_cast %69 : vector<1x1x512xf32> to vector<1x512xf32>
    %71 = arith.addf %70, %62 : vector<1x512xf32>
    %c0_29 = arith.constant 0 : index
    %c1_30 = arith.constant 1 : index
    %c0_31 = arith.constant 0 : index
    %72 = vector.load %arg5[%c0_29, %c1_30, %c0_31] : memref<1x4x512xf32, #tpu.memory_space<vmem>>, vector<1x1x512xf32>
    %73 = vector.shape_cast %72 : vector<1x1x512xf32> to vector<1x512xf32>
    %74 = vector.shape_cast %71 : vector<1x512xf32> to vector<1x1x512xf32>
    tpu.vector_store %arg5[%c0_29, %c1_30, %c0_31], %74 {strides = array<i32>} : memref<1x4x512xf32, #tpu.memory_space<vmem>>, vector<1x1x512xf32>,
    %c0_32 = arith.constant 0 : index
    %c2 = arith.constant 2 : index
    %c0_33 = arith.constant 0 : index
    %75 = vector.load %arg5[%c0_32, %c2, %c0_33] : memref<1x4x512xf32, #tpu.memory_space<vmem>>, vector<1x1x512xf32>
    %76 = vector.shape_cast %75 : vector<1x1x512xf32> to vector<1x512xf32>
    %77 = arith.addf %76, %9 : vector<1x512xf32>
    %c0_34 = arith.constant 0 : index
    %c2_35 = arith.constant 2 : index
    %c0_36 = arith.constant 0 : index
    %78 = vector.load %arg5[%c0_34, %c2_35, %c0_36] : memref<1x4x512xf32, #tpu.memory_space<vmem>>, vector<1x1x512xf32>
    %79 = vector.shape_cast %78 : vector<1x1x512xf32> to vector<1x512xf32>
    %80 = vector.shape_cast %77 : vector<1x512xf32> to vector<1x1x512xf32>
    tpu.vector_store %arg5[%c0_34, %c2_35, %c0_36], %80 {strides = array<i32>} : memref<1x4x512xf32, #tpu.memory_space<vmem>>, vector<1x1x512xf32>,
    %c0_37 = arith.constant 0 : index
    %c3 = arith.constant 3 : index
    %c0_38 = arith.constant 0 : index
    %81 = vector.load %arg5[%c0_37, %c3, %c0_38] : memref<1x4x512xf32, #tpu.memory_space<vmem>>, vector<1x1x512xf32>
    %82 = vector.shape_cast %81 : vector<1x1x512xf32> to vector<1x512xf32>
    %83 = arith.addf %82, %11 : vector<1x512xf32>
    %c0_39 = arith.constant 0 : index
    %c3_40 = arith.constant 3 : index
    %c0_41 = arith.constant 0 : index
    %84 = vector.load %arg5[%c0_39, %c3_40, %c0_41] : memref<1x4x512xf32, #tpu.memory_space<vmem>>, vector<1x1x512xf32>
    %85 = vector.shape_cast %84 : vector<1x1x512xf32> to vector<1x512xf32>
    %86 = vector.shape_cast %83 : vector<1x512xf32> to vector<1x1x512xf32>
    tpu.vector_store %arg5[%c0_39, %c3_40, %c0_41], %86 {strides = array<i32>} : memref<1x4x512xf32, #tpu.memory_space<vmem>>, vector<1x1x512xf32>,
    return
  }
  func.func @transform_0(%arg0: i32, %arg1: i32) -> (i32, i32) {
    %c1_i32 = arith.constant 1 : i32
    %0 = arith.muli %arg0, %c1_i32 : i32
    %1 = arith.addi %0, %arg1 : i32
    %c0_i32 = arith.constant 0 : i32
    %c0_i32_0 = arith.constant 0 : i32
    return %c0_i32, %1 : i32, i32
  }
  func.func @transform_1(%arg0: i32, %arg1: i32) -> (i32, i32) {
    %c1_i32 = arith.constant 1 : i32
    %0 = arith.muli %arg0, %c1_i32 : i32
    %1 = arith.addi %0, %arg1 : i32
    %c0_i32 = arith.constant 0 : i32
    %c0_i32_0 = arith.constant 0 : i32
    return %c0_i32, %1 : i32, i32
  }
  func.func @transform_2(%arg0: i32, %arg1: i32) -> (i32, i32) {
    %c1_i32 = arith.constant 1 : i32
    %0 = arith.muli %arg0, %c1_i32 : i32
    %1 = arith.addi %0, %arg1 : i32
    %c0_i32 = arith.constant 0 : i32
    %c0_i32_0 = arith.constant 0 : i32
    return %c0_i32, %1 : i32, i32
  }
  func.func @transform_3(%arg0: i32, %arg1: i32) -> (i32, i32, i32) {
    %c0_i32 = arith.constant 0 : i32
    %c0_i32_0 = arith.constant 0 : i32
    %c0_i32_1 = arith.constant 0 : i32
    return %arg0, %c0_i32, %c0_i32_0 : i32, i32, i32
  }
}

</mosaic_0001>

<bundles_post_ra>
// kernel: tpu_custom_call.1
= control target key start
LH: loop header
LB: loop body
LE: loop exit
PB: predicated region body
PF: predicated region fallthrough
CT: control target
= control target key end

     0   :  { %8 = vsyncpa [#allocation3], 0  ;;  %s943_s0 = inlined_call_operand.hbm [shape: s32[1,512], index: 0, kind: input, shape index: {}]   ;;  %s944_s1 = inlined_call_operand.hbm [shape: bf16[8,512], index: 1, kind: input, shape index: {}]   ;;  %s945_s2 = inlined_call_operand.hbm [shape: bf16[20,512], index: 2, kind: input, shape index: {}]   ;;  %s946_s3 = inlined_call_operand.hbm [shape: f32[1,4,512], index: 3, kind: output, shape index: {}]  }
   0x1   :  { %9 = vsyncpa [#allocation6], 0  ;;  %s34_s14 = sshll.u32 %s944_s1, 4  ;;  %s35_s14 = int_to_ptr.hbm [resolvable:$true] %s34_s14 }
   0x2   :  { %10 = vsyncpa [#allocation4], 0  ;;  %s660_s15 = smov [#allocation5]   ;;  %s19_s19 = sshll.u32 %s943_s0, 4  ;;  %s20_s19 = int_to_ptr.hbm [resolvable:$true] %s19_s19 }
   0x3   :  { %s36_s16 = sshll.u32 %s660_s15, 4  ;;  %s661_s20 = smov [#allocation2]   ;;  %s37_s16 = int_to_ptr.vmem [resolvable:$true] %s36_s16 }
   0x4   :  { %39 = dma.hbm_to_vmem [thread:$0]  %s35_s14, 256, %s37_s16, [#allocation6]  }
   0x5   :  { %s21_s21 = sshll.u32 %s661_s20, 4  ;;  %s48_s24 = sshll.u32 %s945_s2, 4  ;;  %s22_s21 = int_to_ptr.vmem [resolvable:$true] %s21_s21  ;;  %s49_s24 = int_to_ptr.hbm [resolvable:$true] %s48_s24 }
   0x6   :  { %24 = dma.hbm_to_vmem [thread:$0]  %s20_s19, 64, %s22_s21, [#allocation3]  }
   0x7   :  { %s662_s1 = smov [#allocation7]   ;;  %s663_s26 = smov 256  }
   0x8   :  { %s50_s25 = sshll.u32 %s662_s1, 4  ;;  %s664_s27 = smov 16   ;;  %s51_s25 = int_to_ptr.vmem [resolvable:$true] %s50_s25 }
   0x9   :  { %56 = dma.hbm_to_vmem [thread:$0]  %s49_s24, 768, %s51_s25, [#allocation6], %s663_s26, %s663_s26, %s664_s27  }
   0xa   :  { %654 = dma.done.wait [#allocation3], 64  }
   0xb   :  { %655 = vsyncadd [#allocation3], 4294967232 }
   0xc   :  { %656 = dma.done.wait [#allocation6], 1024  }
   0xd   :  { %657 = vsyncadd [#allocation6], 4294966272  ;;  %v665_v0 = vmov 0.0   ;;  %v88_v1 = vld [vmem:[#allocation5] sm:$0xff]  ;;  %v89_v2 = vld [vmem:[#allocation5 + $0x8] sm:$0xff]  ;;  %v196_v11 = vlaneseq  ;;  %vm947_vm4 = vcmask 1043456  }
   0xe   :  { %79 = vst [vmem:[#allocation8] sm:$0xff] %v665_v0  ;;  %v90_v3 = vunpack.c.l.bf16 %v88_v1  ;;  %v91_v4 = vunpack.c.h.bf16 %v88_v1  ;;  %v92_v5 = vunpack.c.l.bf16 %v89_v2  ;;  %v93_v6 = vunpack.c.h.bf16 %v89_v2  ;;  %v178_v44 = vld [vmem:[#allocation7] sm:$0xff]  ;;  %v179_v45 = vld [vmem:[#allocation7 + $0x8] sm:$0xff]  ;;  %v180_v52 = vld [vmem:[#allocation7 + $0x10] sm:$0xff]  ;;  %s667_s0 = smov [#allocation8]   ;;  %s485_s30 = sshll.u32 %s946_s3, 4  ;;  %s486_s30 = int_to_ptr.hbm [resolvable:$true] %s485_s30 }
   0xf   :  { %80 = vst [vmem:[#allocation8 + $0x8] sm:$0xff] %v665_v0  ;;  %v197_v20 = vshrl.u32 %v196_v11, 7  ;;  %v708_v46 = vld [vmem:[#allocation2] sm:$0xf]  ;;  %v181_v53 = vld [vmem:[#allocation7 + $0x18] sm:$0xff]  ;;  %v184_v54 = vunpack.c.l.bf16 %v178_v44  ;;  %v185_v55 = vunpack.c.h.bf16 %v178_v44  ;;  %v186_v56 = vunpack.c.l.bf16 %v179_v45  ;;  %s483_s2 = sshll.u32 %s667_s0, 4  ;;  %s484_s2 = int_to_ptr.vmem [resolvable:$true] %s483_s2 }
  0x10   :  { %v98_v7 = vrot.slane %v90_v3, 4  ;;  %v99_v8 = vrot.slane %v91_v4, 4  ;;  %v100_v9 = vrot.slane %v92_v5, 4  ;;  %v101_v10 = vrot.slane %v93_v6, 4  ;;  %v182_v59 = vld [vmem:[#allocation7 + $0x20] sm:$0x33] }
  0x11   :  { %v198_v35 = vadd.s32 8, %v197_v20  ;;  %v199_v42 = vadd.s32 16, %v197_v20  ;;  %v710_v50 = vadd.s32 1, %v197_v20  ;;  %v183_v60 = vld [vmem:[#allocation7 + $0x28] sm:$0x33]  ;;  %v187_v61 = vunpack.c.h.bf16 %v179_v45 }
  0x12   :  { %v106_v12 = vsub.f32 %v90_v3, %v98_v7  ;;  %v107_v13 = vsub.f32 %v91_v4, %v99_v8  ;;  %v108_v14 = vsub.f32 %v92_v5, %v100_v9  ;;  %v109_v15 = vsub.f32 %v93_v6, %v101_v10 }
  0x13   :  { %v712_v51 = vadd.s32 1, %v198_v35  ;;  %v714_v57 = vadd.s32 1, %v199_v42  ;;  %v717_v62 = vperm.slane %v708_v46, 0  ;;  %v720_v63 = vperm.slane %v708_v46, 1 }
  0x14   :  { %v110_v16 = vand.u32 2147483647, %v106_v12  ;;  %v111_v17 = vand.u32 2147483647, %v107_v13  ;;  %v112_v18 = vand.u32 2147483647, %v108_v14  ;;  %v188_v2 = vunpack.c.l.bf16 %v180_v52 }
  0x15   :  { %v113_v19 = vand.u32 2147483647, %v109_v15  ;;  %v723_v3 = vperm.slane %v708_v46, 2  ;;  %v726_v4 = vperm.slane %v708_v46, 3  ;;  %v189_v7 = vunpack.c.h.bf16 %v180_v52 }
  0x16   :  { %vm114_vm0 = vcmp.lt.f32.partialorder %v110_v16, 1.0  ;;  %vm115_vm1 = vcmp.lt.f32.partialorder %v111_v17, 1.0  ;;  %v118_v21 = vmul.f32 0.5, %v110_v16  ;;  %v119_v22 = vmul.f32 0.5, %v111_v17 }
  0x17   :  { %vm116_vm2 = vcmp.lt.f32.partialorder %v112_v18, 1.0  ;;  %vm117_vm3 = vcmp.lt.f32.partialorder %v113_v19, 1.0  ;;  %v120_v23 = vmul.f32 0.5, %v112_v18  ;;  %v121_v24 = vmul.f32 0.5, %v113_v19 }
  0x18   :  { %v122_v25 = vmul.f32 %v118_v21, %v110_v16  ;;  %v123_v26 = vmul.f32 %v119_v22, %v111_v17  ;;  %v498_v27 = vadd.f32 -0.5, %v110_v16  ;;  %v499_v28 = vadd.f32 -0.5, %v111_v17 }
  0x19   :  { %v124_v29 = vmul.f32 %v120_v23, %v112_v18  ;;  %v125_v30 = vmul.f32 %v121_v24, %v113_v19  ;;  %v500_v31 = vadd.f32 -0.5, %v112_v18  ;;  %v501_v32 = vadd.f32 -0.5, %v113_v19 }
  0x1a   :  { %v130_v33 = vsel %vm114_vm0, %v122_v25, %v498_v27  ;;  %v131_v34 = vsel %vm115_vm1, %v123_v26, %v499_v28  ;;  %v190_v8 = vunpack.c.l.bf16 %v181_v53  ;;  %v191_v9 = vunpack.c.h.bf16 %v181_v53 }
  0x1b   :  { %v132_v36 = vsel %vm116_vm2, %v124_v29, %v500_v31  ;;  %v133_v37 = vsel %vm117_vm3, %v125_v30, %v501_v32  ;;  %v135_v38 = vsel %vm947_vm4, %v130_v33, 0.0  ;;  %v142_v39 = vsel %vm947_vm4, %v131_v34, 0.0 }
  0x1c   :  { %v149_v40 = vsel %vm947_vm4, %v132_v36, 0.0  ;;  %v156_v41 = vsel %vm947_vm4, %v133_v37, 0.0  ;;  %v136_v43 = vrot.slane %v135_v38, 4  ;;  %v143_v47 = vrot.slane %v142_v39, 4 }
  0x1d   :  { %v150_v48 = vrot.slane %v149_v40, 4  ;;  %v157_v49 = vrot.slane %v156_v41, 4  ;;  %v192_v10 = vunpack.c.l.bf16 %v182_v59  ;;  %v193_v12 = vunpack.c.h.bf16 %v182_v59 }
  0x1e   :  { %v137_v58 = vadd.f32 %v136_v43, %v135_v38  ;;  %v144_v1 = vadd.f32 %v143_v47, %v142_v39  ;;  %v194_v13 = vunpack.c.l.bf16 %v183_v60  ;;  %v195_v15 = vunpack.c.h.bf16 %v183_v60 }
  0x1f   :  { %v151_v5 = vadd.f32 %v150_v48, %v149_v40  ;;  %v158_v6 = vadd.f32 %v157_v49, %v156_v41  ;;  %vm207_vm5 = vcmp.eq.s32.totalorder %v717_v62, %v710_v50  ;;  %vm208_vm6 = vcmp.eq.s32.totalorder %v720_v63, %v710_v50 }
  0x20   :  { %v138_v14 = vrot.slane %v137_v58, 2  ;;  %v145_v16 = vrot.slane %v144_v1, 2  ;;  %vm209_vm7 = vcmp.eq.s32.totalorder %v723_v3, %v710_v50  ;;  %vm210_vm8 = vcmp.eq.s32.totalorder %v726_v4, %v710_v50 }
  0x21   :  { %vm211_vm9 = vcmp.eq.s32.totalorder %v717_v62, %v712_v51  ;;  %v152_v17 = vrot.slane %v151_v5, 2  ;;  %v159_v18 = vrot.slane %v158_v6, 2  ;;  %vm212_vm10 = vcmp.eq.s32.totalorder %v720_v63, %v712_v51 }
  0x22   :  { %v219_v19 = vadd.f32 %v184_v54, %v184_v54  ;;  %vm213_vm11 = vcmp.eq.s32.totalorder %v723_v3, %v712_v51  ;;  %v220_v20 = vadd.f32 %v185_v55, %v185_v55  ;;  %v221_v21 = vadd.f32 %v186_v56, %v186_v56 }
  0x23   :  { %v222_v22 = vadd.f32 %v187_v61, %v187_v61  ;;  %v742_v23 = vadd.f32 %v138_v14, %v137_v58  ;;  %vm214_vm12 = vcmp.eq.s32.totalorder %v726_v4, %v712_v51  ;;  %v223_v24 = vadd.f32 %v188_v2, %v188_v2 }
  0x24   :  { %v224_v25 = vadd.f32 %v189_v7, %v189_v7  ;;  %v146_v26 = vadd.f32 %v145_v16, %v144_v1  ;;  %v225_v27 = vadd.f32 %v190_v8, %v190_v8  ;;  %v226_v28 = vadd.f32 %v191_v9, %v191_v9 }
  0x25   :  { %v227_v29 = vadd.f32 %v192_v10, %v192_v10  ;;  %vm215_vm13 = vcmp.eq.s32.totalorder %v717_v62, %v714_v57  ;;  %vm216_vm14 = vcmp.eq.s32.totalorder %v720_v63, %v714_v57  ;;  %v228_v30 = vadd.f32 %v193_v12, %v193_v12 }
  0x26   :  { %v231_v31 = vsub.f32 0.0, %v219_v19  ;;  %v153_v32 = vadd.f32 %v152_v17, %v151_v5  ;;  %v232_v33 = vsub.f32 0.0, %v220_v20  ;;  %v233_v34 = vsub.f32 0.0, %v221_v21 }
  0x27   :  { %v234_v35 = vsub.f32 0.0, %v222_v22  ;;  %v229_v36 = vadd.f32 %v194_v13, %v194_v13  ;;  %v230_v37 = vadd.f32 %v195_v15, %v195_v15  ;;  %v235_v38 = vsub.f32 0.0, %v223_v24 }
  0x28   :  { %v236_v39 = vsub.f32 0.0, %v224_v25  ;;  %v160_v40 = vadd.f32 %v159_v18, %v158_v6  ;;  %v237_v41 = vsub.f32 0.0, %v225_v27  ;;  %v238_v42 = vsub.f32 0.0, %v226_v28 }
  0x29   :  { %v239_v43 = vsub.f32 0.0, %v227_v29  ;;  %vm217_vm15 = vcmp.eq.s32.totalorder %v723_v3, %v714_v57  ;;  %vm948_vm0 = vcmp.eq.s32.totalorder %v726_v4, %v714_v57  ;;  %v240_v44 = vsub.f32 0.0, %v228_v30 }
  0x2a   :  { %v243_v45 = vsel %vm207_vm5, %v219_v19, %v231_v31  ;;  %v147_v47 = vrot.slane %v146_v26, 1  ;;  %v244_v48 = vsel %vm208_vm6, %v220_v20, %v232_v33  ;;  %v245_v49 = vsel %vm209_vm7, %v221_v21, %v233_v34 }
  0x2b   :  { %v246_v52 = vsel %vm210_vm8, %v222_v22, %v234_v35  ;;  %v241_v53 = vsub.f32 0.0, %v229_v36  ;;  %v242_v54 = vsub.f32 0.0, %v230_v37  ;;  %v247_v55 = vsel %vm211_vm9, %v223_v24, %v235_v38 }
  0x2c   :  { %v248_v56 = vsel %vm212_vm10, %v224_v25, %v236_v39  ;;  %v249_v58 = vsel %vm213_vm11, %v225_v27, %v237_v41  ;;  %v250_v59 = vsel %vm214_vm12, %v226_v28, %v238_v42  ;;  %v251_v60 = vsel %vm215_vm13, %v227_v29, %v239_v43 }
  0x2d   :  { %v781_v61 = vadd.f32 1.0, %v243_v45  ;;  %v252_v1 = vsel %vm216_vm14, %v228_v30, %v240_v44  ;;  %v786_v2 = vadd.f32 1.0, %v244_v48  ;;  %v788_v5 = vadd.f32 1.0, %v245_v49 }
  0x2e   :  { %v790_v6 = vadd.f32 1.0, %v246_v52  ;;  %v140_v7 = vrot.slane %v742_v23, 1  ;;  %v154_v8 = vrot.slane %v153_v32, 1  ;;  %v793_v9 = vadd.f32 1.0, %v247_v55 }
  0x2f   :  { %v795_v10 = vadd.f32 1.0, %v248_v56  ;;  %v161_v12 = vrot.slane %v160_v40, 1  ;;  %v253_v13 = vsel %vm217_vm15, %v229_v36, %v241_v53  ;;  %v254_v14 = vsel %vm948_vm0, %v230_v37, %v242_v54 }
  0x30   :  { %v803_v15 = vadd.f32 1.0, %v249_v58  ;;  %vm170_vm1 = vcmask 1040384   ;;  %v805_v16 = vadd.f32 1.0, %v250_v59  ;;  %v807_v17 = vadd.f32 1.0, %v251_v60 }
  0x31   :  { %v809_v18 = vadd.f32 1.0, %v252_v1  ;;  %v279_v19 = vand.u32 2147483647, %v781_v61  ;;  %v148_v20 = vadd.f32 %v147_v47, %v146_v26  ;;  %v280_v21 = vand.u32 2147483647, %v786_v2 }
  0x32   :  { %v281_v22 = vand.u32 2147483647, %v788_v5  ;;  %v282_v24 = vand.u32 2147483647, %v790_v6  ;;  %v815_v25 = vadd.f32 1.0, %v253_v13  ;;  %v817_v27 = vadd.f32 1.0, %v254_v14 }
  0x33   :  { %v283_v28 = vand.u32 2147483647, %v793_v9  ;;  %v284_v29 = vand.u32 2147483647, %v795_v10  ;;  %v141_v30 = vadd.f32 %v140_v7, %v742_v23  ;;  %v155_v31 = vadd.f32 %v154_v8, %v153_v32 }
  0x34   :  { %v162_v33 = vadd.f32 %v161_v12, %v160_v40  ;;  %v285_v26 = vand.u32 2147483647, %v803_v15  ;;  %v286_v34 = vand.u32 2147483647, %v805_v16  ;;  %v287_v35 = vand.u32 2147483647, %v807_v17 }
  0x35   :  { %v291_v36 = vsub.f32 0.0, %v279_v19  ;;  %v292_v37 = vsub.f32 0.0, %v280_v21  ;;  %v288_v38 = vand.u32 2147483647, %v809_v18  ;;  %v293_v39 = vsub.f32 0.0, %v281_v22 }
  0x36   :  { %v294_v41 = vsub.f32 0.0, %v282_v24  ;;  %v295_v42 = vsub.f32 0.0, %v283_v28  ;;  %v167_v43 = vrot.slane %v148_v20, 7  ;;  %v289_v44 = vand.u32 2147483647, %v815_v25 }
  0x37   :  { %v290_v23 = vand.u32 2147483647, %v817_v27  ;;  %v296_v32 = vsub.f32 0.0, %v284_v29  ;;  %v168_v40 = vrot.slane %v155_v31, 6  ;;  %v297_v45 = vsub.f32 0.0, %v285_v26 }
  0x38   :  { %v303_v47 = vmul.f32 1.442695, %v291_v36  ;;  %v305_v48 = vmul.f32 1.442695, %v292_v37  ;;  %v169_v49 = vrot.slane %v162_v33, 5  ;;  %v298_v52 = vsub.f32 0.0, %v286_v34 }
  0x39   :  { %v307_v53 = vmul.f32 1.442695, %v293_v39  ;;  %v309_v54 = vmul.f32 1.442695, %v294_v41  ;;  %vm172_vm2 = vcmask 1042434   ;;  %v299_v55 = vsub.f32 0.0, %v287_v35 }
  0x3a   :  { %510 = vpow2.f32 %v303_v47  ;;  %v311_v56 = vmul.f32 1.442695, %v295_v42  ;;  %vm174_vm3 = vcmask 1041408   ;;  %v300_v58 = vsub.f32 0.0, %v288_v38 }
  0x3b   :  { %512 = vpow2.f32 %v305_v48  ;;  %v313_v59 = vmul.f32 1.442695, %v296_v32  ;;  %v171_v60 = vsel %vm170_vm1, %v141_v30, %v167_v43  ;;  %v301_v1 = vsub.f32 0.0, %v289_v44 }
  0x3c   :  { %514 = vpow2.f32 %v307_v53  ;;  %v315_v7 = vmul.f32 1.442695, %v297_v45  ;;  %v173_v8 = vsel %vm172_vm2, %v168_v40, %v169_v49  ;;  %v302_v12 = vsub.f32 0.0, %v290_v23 }
  0x3d   :  { %516 = vpow2.f32 %v309_v54  ;;  %v317_v13 = vmul.f32 1.442695, %v298_v52  ;;  %v319_v14 = vmul.f32 1.442695, %v299_v55  ;;  %vm82_vm4 = vcmp.gt.s32.totalorder %v708_v46, 0 }
  0x3e   :  { %518 = vpow2.f32 %v311_v56  ;;  %vm83_vm0 = vcmp.gt.s32.totalorder %v708_v46, 4294967295  ;;  %v321_v19 = vmul.f32 1.442695, %v300_v58  ;;  %v175_v21 = vsel %vm174_vm3, %v171_v60, %v173_v8 }
  0x3f   :  { %520 = vpow2.f32 %v313_v59  ;;  %v323_v22 = vmul.f32 1.442695, %v301_v1  ;;  %v325_v28 = vmul.f32 1.442695, %v302_v12  ;;  %v836_v30 = vsel %vm82_vm4, 1.0, %v665_v0 }
  0x40   :  { %v511_v20 = vpop.eup %510  ;;  %522 = vpow2.f32 %v315_v7  ;;  %v841_v31 = vsel %vm83_vm0, 1.0, %v665_v0  ;;  %v845_v34 = vsel %vm82_vm4, %v175_v21, 0.0  ;;  %v267_v35 = vmin.f32 %v781_v61, 0.0 }
  0x41   :  { %v513_v24 = vpop.eup %512  ;;  %524 = vpow2.f32 %v317_v13  ;;  %v327_v33 = vadd.f32 1.0, %v511_v20  ;;  %v268_v38 = vmin.f32 %v786_v2, 0.0  ;;  %v269_v39 = vmin.f32 %v788_v5, 0.0 }
  0x42   :  { %v515_v29 = vpop.eup %514  ;;  %526 = vpow2.f32 %v319_v14  ;;  %v328_v36 = vadd.f32 1.0, %v513_v24  ;;  %v270_v42 = vmin.f32 %v790_v6, 0.0  ;;  %v271_v43 = vmin.f32 %v793_v9, 0.0 }
  0x43   :  { %v517_v26 = vpop.eup %516  ;;  %528 = vpow2.f32 %v321_v19  ;;  %v329_v41 = vadd.f32 1.0, %v515_v29  ;;  %v272_v32 = vmin.f32 %v795_v10, 0.0  ;;  %v273_v61 = vmin.f32 %v803_v15, 0.0 }
  0x44   :  { %v519_v37 = vpop.eup %518  ;;  %530 = vpow2.f32 %v323_v22  ;;  %v330_v44 = vadd.f32 1.0, %v517_v26  ;;  %v274_v2 = vmin.f32 %v805_v16, 0.0  ;;  %v275_v49 = vmin.f32 %v807_v17, 0.0 }
  0x45   :  { %v521_v0 = vpop.eup %520  ;;  %532 = vpow2.f32 %v325_v28  ;;  %v331_v40 = vadd.f32 1.0, %v519_v37  ;;  %v276_v52 = vmin.f32 %v809_v18, 0.0  ;;  %v277_v55 = vmin.f32 %v815_v25, 0.0 }
  0x46   :  { %v523_v23 = vpop.eup %522  ;;  %534 = vlog2.f32 %v327_v33  ;;  %v332_v47 = vadd.f32 1.0, %v521_v0  ;;  %v278_v56 = vmin.f32 %v817_v27, 0.0  ;;  %v666_v1 = vmov -0.5  }
  0x47   :  { %v525_v45 = vpop.eup %524  ;;  %536 = vlog2.f32 %v328_v36  ;;  %v333_v53 = vadd.f32 1.0, %v523_v23  ;;  %v387_v7 = vsel %vm207_vm5, -0.16666667, %v666_v1  ;;  %v388_v8 = vsel %vm208_vm6, -0.16666667, %v666_v1 }
  0x48   :  { %v527_v48 = vpop.eup %526  ;;  %538 = vlog2.f32 %v329_v41  ;;  %v334_v58 = vadd.f32 1.0, %v525_v45  ;;  %v389_v14 = vsel %vm209_vm7, -0.16666667, %v666_v1  ;;  %v390_v19 = vsel %vm210_vm8, -0.16666667, %v666_v1 }
  0x49   :  { %v529_v54 = vpop.eup %528  ;;  %540 = vlog2.f32 %v330_v44  ;;  %v335_v60 = vadd.f32 1.0, %v527_v48  ;;  %v391_v22 = vsel %vm211_vm9, -0.16666667, %v666_v1  ;;  %v392_v24 = vsel %vm212_vm10, -0.16666667, %v666_v1 }
  0x4a   :  { %v531_v59 = vpop.eup %530  ;;  %542 = vlog2.f32 %v331_v40  ;;  %v336_v13 = vadd.f32 1.0, %v529_v54  ;;  %v393_v50 = vsel %vm213_vm11, -0.16666667, %v666_v1  ;;  %v394_v37 = vsel %vm214_vm12, -0.16666667, %v666_v1 }
  0x4b   :  { %v533_v12 = vpop.eup %532  ;;  %544 = vlog2.f32 %v332_v47  ;;  %v337_v21 = vadd.f32 1.0, %v531_v59  ;;  %v395_v41 = vsel %vm215_vm13, -0.16666667, %v666_v1  ;;  %v396_v40 = vsel %vm216_vm14, -0.16666667, %v666_v1 }
  0x4c   :  { %v535_v20 = vpop.eup %534  ;;  %546 = vlog2.f32 %v333_v53  ;;  %v338_v29 = vadd.f32 1.0, %v533_v12  ;;  %v397_v51 = vsel %vm217_vm15, -0.16666667, %v666_v1  ;;  %vm949_vm4 = vcmp.eq.s32.totalorder %v726_v4, %v714_v57 }
  0x4d   :  { %v537_v28 = vpop.eup %536  ;;  %v340_v33 = vmul.f32 0.6931472, %v535_v20  ;;  %548 = vlog2.f32 %v334_v58  ;;  %vm917_vm5 = vcmp.lt.s32.totalorder %v196_v11, 512  ;;  %vm952_vm6 = vcmask 1043456  }
  0x4e   :  { %v539_v26 = vpop.eup %538  ;;  %v342_v36 = vmul.f32 0.6931472, %v537_v28  ;;  %550 = vlog2.f32 %v335_v60  ;;  %vm953_vm7 = vmmov %vm952_vm6 }
  0x4f   :  { %v541_v0 = vpop.eup %540  ;;  %v344_v44 = vmul.f32 0.6931472, %v539_v26  ;;  %552 = vlog2.f32 %v336_v13  ;;  %v363_v23 = vsub.f32 %v267_v35, %v340_v33  ;;  %vm954_vm8 = vmmov %vm952_vm6 }
  0x50   :  { %v543_v45 = vpop.eup %542  ;;  %v346_v47 = vmul.f32 0.6931472, %v541_v0  ;;  %554 = vlog2.f32 %v337_v21  ;;  %v364_v48 = vsub.f32 %v268_v38, %v342_v36  ;;  %v398_v38 = vsel %vm949_vm4, -0.16666667, %v666_v1  ;;  %vm955_vm9 = vmmov %vm952_vm6 }
  0x51   :  { %v545_v53 = vpop.eup %544  ;;  %v348_v54 = vmul.f32 0.6931472, %v543_v45  ;;  %556 = vlog2.f32 %v338_v29  ;;  %v365_v62 = vsub.f32 %v269_v39, %v344_v44  ;;  %v375_v58 = vmax.f32 %v363_v23, -16.118095 }
  0x52   :  { %v547_v35 = vpop.eup %546  ;;  %v350_v59 = vmul.f32 0.6931472, %v545_v53  ;;  %v366_v63 = vsub.f32 %v270_v42, %v346_v47  ;;  %v376_v60 = vmax.f32 %v364_v48, -16.118095 }
  0x53   :  { %v549_v12 = vpop.eup %548  ;;  %v352_v3 = vmul.f32 0.6931472, %v547_v35  ;;  %v367_v13 = vsub.f32 %v271_v43, %v348_v54  ;;  %v377_v20 = vmax.f32 %v365_v62, -16.118095  ;;  %v399_v21 = vmul.f32 %v387_v7, %v375_v58 }
  0x54   :  { %v551_v5 = vpop.eup %550  ;;  %v354_v39 = vmul.f32 0.6931472, %v549_v12  ;;  %v368_v28 = vsub.f32 %v272_v32, %v350_v59  ;;  %v378_v29 = vmax.f32 %v366_v63, -16.118095  ;;  %v400_v6 = vmul.f32 %v388_v8, %v376_v60 }
  0x55   :  { %v553_v42 = vpop.eup %552  ;;  %v356_v33 = vmul.f32 0.6931472, %v551_v5  ;;  %v369_v57 = vsub.f32 %v273_v61, %v352_v3  ;;  %v379_v4 = vmax.f32 %v367_v13, -16.118095  ;;  %v401_v1 = vmul.f32 %v389_v14, %v377_v20 }
  0x56   :  { %v555_v26 = vpop.eup %554  ;;  %v358_v36 = vmul.f32 0.6931472, %v553_v42  ;;  %v370_v9 = vsub.f32 %v274_v2, %v354_v39  ;;  %v380_v43 = vmax.f32 %v368_v28, -16.118095  ;;  %v402_v7 = vmul.f32 %v390_v19, %v378_v29 }
  0x57   :  { %v557_v0 = vpop.eup %556  ;;  %v360_v44 = vmul.f32 0.6931472, %v555_v26  ;;  %v371_v10 = vsub.f32 %v275_v49, %v356_v33  ;;  %v381_v32 = vmax.f32 %v369_v57, -16.118095  ;;  %v403_v8 = vmul.f32 %v391_v22, %v379_v4 }
  0x58   :  { %v362_v23 = vmul.f32 0.6931472, %v557_v0  ;;  %v372_v15 = vsub.f32 %v276_v52, %v358_v36  ;;  %v382_v61 = vmax.f32 %v370_v9, -16.118095  ;;  %v404_v14 = vmul.f32 %v392_v24, %v380_v43 }
  0x59   :  { %v373_v45 = vsub.f32 %v277_v55, %v360_v44  ;;  %v383_v16 = vmax.f32 %v371_v10, -16.118095  ;;  %v405_v2 = vmul.f32 %v393_v50, %v381_v32  ;;  %v411_v47 = vadd.f32 %v403_v8, %v399_v21  ;;  %v459_v19 = vld [vmem:[#allocation8] ss:$4 sm:$0xf] }
  0x5a   :  { %v374_v48 = vsub.f32 %v278_v56, %v362_v23  ;;  %v384_v17 = vmax.f32 %v372_v15, -16.118095  ;;  %v406_v49 = vmul.f32 %v394_v37, %v382_v61  ;;  %v420_v53 = vadd.f32 %v404_v14, %v400_v6  ;;  %v471_v52 = vld [vmem:[#allocation8 + $0x2] ss:$4 sm:$0xf] }
  0x5b   :  { %v385_v22 = vmax.f32 %v373_v45, -16.118095  ;;  %v407_v54 = vmul.f32 %v395_v41, %v383_v16  ;;  %v429_v62 = vadd.f32 %v405_v2, %v401_v1  ;;  %v460_v18 = vadd.f32 %v459_v19, %v845_v34  ;;  %v475_v50 = vld [vmem:[#allocation8 + $0x3] ss:$4 sm:$0xf] }
  0x5c   :  { %v386_v24 = vmax.f32 %v374_v48, -16.118095  ;;  %v408_v58 = vmul.f32 %v396_v40, %v384_v17  ;;  %v438_v25 = vadd.f32 %v406_v49, %v402_v7  ;;  %v472_v37 = vadd.f32 %v836_v30, %v471_v52  ;;  %v467_v15 = vld [vmem:[#allocation8 + $0x1] ss:$4 sm:$0xf] }
  0x5d   :  { %v409_v27 = vmul.f32 %v397_v51, %v385_v22  ;;  %v412_v56 = vsel %vm952_vm6, %v407_v54, 0.0  ;;  %465 = vst.msk [vmem:[#allocation8] ss:$4 sm:$0xf] %vm917_vm5, %v460_v18  ;;  %v476_v34 = vadd.f32 %v841_v31, %v475_v50 }
  0x5e   :  { %v410_v41 = vmul.f32 %v398_v38, %v386_v24  ;;  %v413_v35 = vadd.f32 %v412_v56, %v411_v47  ;;  %v421_v40 = vsel %vm953_vm7, %v408_v58, 0.0  ;;  %473 = vst.msk [vmem:[#allocation8 + $0x2] ss:$4 sm:$0xf] %vm917_vm5, %v472_v37 }
  0x5f   :  { %v422_v59 = vadd.f32 %v421_v40, %v420_v53  ;;  %v430_v11 = vsel %vm954_vm8, %v409_v27, 0.0  ;;  %477 = vst.msk [vmem:[#allocation8 + $0x3] ss:$4 sm:$0xf] %vm917_vm5, %v476_v34 }
  0x60   :  { %v414_v51 = vrot.slane %v413_v35, 4  ;;  %v431_v63 = vadd.f32 %v430_v11, %v429_v62  ;;  %v439_v60 = vsel %vm955_vm9, %v410_v41, 0.0 }
  0x61   :  { %v423_v30 = vrot.slane %v422_v59, 4  ;;  %v440_v12 = vadd.f32 %v439_v60, %v438_v25 }
  0x62   :  { %v415_v31 = vadd.f32 %v414_v51, %v413_v35  ;;  %v432_v38 = vrot.slane %v431_v63, 4 }
  0x63   :  { %v424_v3 = vadd.f32 %v423_v30, %v422_v59  ;;  %v441_v13 = vrot.slane %v440_v12, 4 }
  0x64   :  { %v416_v20 = vrot.slane %v415_v31, 2  ;;  %v433_v21 = vadd.f32 %v432_v38, %v431_v63 }
  0x65   :  { %v425_v5 = vrot.slane %v424_v3, 2  ;;  %v442_v39 = vadd.f32 %v441_v13, %v440_v12 }
  0x66   :  { %v417_v28 = vadd.f32 %v416_v20, %v415_v31  ;;  %v434_v29 = vrot.slane %v433_v21, 2 }
  0x67   :  { %v426_v6 = vadd.f32 %v425_v5, %v424_v3  ;;  %v443_v42 = vrot.slane %v442_v39, 2 }
  0x68   :  { %v418_v33 = vrot.slane %v417_v28, 1  ;;  %v435_v57 = vadd.f32 %v434_v29, %v433_v21 }
  0x69   :  { %v427_v4 = vrot.slane %v426_v6, 1  ;;  %v444_v1 = vadd.f32 %v443_v42, %v442_v39 }
  0x6a   :  { %v436_v26 = vrot.slane %v435_v57, 1  ;;  %v419_v36 = vadd.f32 %v418_v33, %v417_v28 }
  0x6b   :  { %v428_v9 = vadd.f32 %v427_v4, %v426_v6  ;;  %v445_v43 = vrot.slane %v444_v1, 1 }
  0x6c   :  { %v437_v7 = vadd.f32 %v436_v26, %v435_v57 }
  0x6d   :  { %v446_v0 = vadd.f32 %v445_v43, %v444_v1  ;;  %v451_v44 = vrot.slane %v428_v9, 7 }
  0x6e   :  { %v452_v10 = vrot.slane %v437_v7, 6 }
  0x6f   :  { %v453_v32 = vrot.slane %v446_v0, 5  ;;  %v454_v8 = vsel %vm170_vm1, %v419_v36, %v451_v44 }
  0x71   :  { %v455_v23 = vsel %vm172_vm2, %v452_v10, %v453_v32 }
  0x72   :  { %v456_v61 = vsel %vm174_vm3, %v454_v8, %v455_v23 }
  0x73   :  { %v458_v14 = vsel %vm83_vm0, %v456_v61, 0.0 }
  0x74   :  { %v468_v45 = vadd.f32 %v467_v15, %v458_v14 }
  0x76   :  { %469 = vst.msk [vmem:[#allocation8 + $0x1] ss:$4 sm:$0xf] %vm917_vm5, %v468_v45 }
  0x77   :  { %488 = dma.vmem_to_hbm [thread:$0]  %s484_s2, 256, %s486_s30, [#allocation4]  }
  0x78   :  { %658 = dma.done.wait [#allocation4], 256  }
  0x79   :  { %659 = vsyncadd [#allocation4], 4294967040 }
  0x7a   :  { %493 = vsyncpa [#allocation3], 1 }
  0x7b   :  { %494 = vsyncpa [#allocation6], 1 }
  0x7c   :  { %495 = vsyncpa [#allocation4], 1 }

</bundles_post_ra>
